<compile_context>
chip_gen: v7x
topology: tpu7x:2x2x1
jax: 0.10.0
libtpu: 0.0.40
codegen_flags: <defaults>
</compile_context>

<pallas_src>
import functools

import jax
import jax.numpy as jnp
from jax import lax
from jax.experimental import pallas as pl
from jax.experimental.pallas import tpu as pltpu


def _conv_block_kernel(cols_ref, w_ref, b_ref, o_ref, *, eps):
    """One grid step == one batch image (fused conv + instance-norm + ReLU).

    cols_ref: (1, K, HW)     im2col slab for this image (bf16), K = C_in*KH*KW
    w_ref:    (C_out, K)     flattened conv weights (bf16), PyTorch OIHW order
    b_ref:    (C_out, 1)     conv bias (f32)
    o_ref:    (1, C_out, HW) output; spatial (HW) on the 128-lane axis (f32)
    """
    cols = cols_ref[0]                                        # (K, HW)

    # Single MXU matmul with f32 accumulation: (C_out, K) @ (K, HW).
    acc = jnp.dot(w_ref[...], cols, preferred_element_type=jnp.float32)
    acc = acc + b_ref[...].astype(jnp.float32)                # lane-broadcast bias

    # InstanceNorm2d: per (image, channel) stats over HW (lane axis, XLU reduce),
    # biased variance, eps inside rsqrt -- matches torch.nn.InstanceNorm2d.
    mean = jnp.mean(acc, axis=1, keepdims=True)               # (C_out, 1)
    centered = acc - mean
    var = jnp.mean(centered * centered, axis=1, keepdims=True)
    inv_std = lax.rsqrt(var + eps)                            # EUP slot

    # ReLU + lane-dense store.
    o_ref[0] = jnp.maximum(centered * inv_std, 0.0).astype(o_ref.dtype)


def conv_block_forward(x_nchw, w_oihw, bias, *, eps=1e-5,
                       compute_dtype=jnp.bfloat16):
    """x_nchw: (N, C_in, H, W) f32; w_oihw: (C_out, C_in, KH, KW); bias: (C_out,).
    Returns (N, C_out, H, W) f32."""
    N, C_in, H, W = x_nchw.shape
    C_out, _, KH, KW = w_oihw.shape
    assert KH % 2 == 1 and KW % 2 == 1, "'same' padding math assumes odd kernel"
    ph, pw = (KH - 1) // 2, (KW - 1) // 2   # 'same', stride 1, dilation 1
    HW = H * W
    K = C_in * KH * KW

    # ---- glue (plain XLA): bf16 cast, spatial pad, im2col with HW on lanes ----
    x = x_nchw.astype(compute_dtype)
    x_pad = jnp.pad(x, ((0, 0), (0, 0), (ph, ph), (pw, pw)))
    cols = jnp.stack(
        [x_pad[:, :, kh:kh + H, kw:kw + W]
         for kh in range(KH) for kw in range(KW)],
        axis=2)                                   # (N, C_in, KH*KW, H, W)
    cols = cols.reshape(N, K, HW)                 # K order (c_in, kh, kw) == OIHW flatten
    w2d = w_oihw.reshape(C_out, K).astype(compute_dtype)
    b2d = bias.reshape(C_out, 1).astype(jnp.float32)

    # ---- pallas_call bookkeeping ----
    in_block = K * HW * jnp.dtype(compute_dtype).itemsize
    out_block = C_out * HW * 4
    const_bytes = C_out * K * 2 + C_out * 4
    vmem_limit = int(min(max(2 * (in_block + out_block) + const_bytes + (1 << 20),
                             4 << 20), 100 << 20))
    cost = pl.CostEstimate(
        flops=2 * N * C_out * K * HW + 8 * N * C_out * HW,
        transcendentals=N * C_out,
        bytes_accessed=N * (in_block + out_block) + const_bytes)

    kernel = functools.partial(_conv_block_kernel, eps=eps)
    out_flat = pl.pallas_call(
        kernel,
        out_shape=jax.ShapeDtypeStruct((N, C_out, HW), jnp.float32),
        grid_spec=pltpu.PrefetchScalarGridSpec(
            num_scalar_prefetch=0,
            grid=(N,),
            in_specs=[
                pl.BlockSpec((1, K, HW), lambda n: (n, 0, 0)),
                pl.BlockSpec((C_out, K), lambda n: (0, 0)),
                pl.BlockSpec((C_out, 1), lambda n: (0, 0)),
            ],
            out_specs=pl.BlockSpec((1, C_out, HW), lambda n: (n, 0, 0)),
        ),
        compiler_params=pltpu.CompilerParams(
            dimension_semantics=("parallel",),
            vmem_limit_bytes=vmem_limit),
        cost_estimate=cost,
    )(cols, w2d, b2d)

    # Already channel-major: just un-flatten the spatial axis.
    return out_flat.reshape(N, C_out, H, W)


def _reference(x_nchw, w_oihw, bias, eps=1e-5, compute_dtype=jnp.bfloat16):
    """Pure-JAX reference at matching precision (bf16 conv operands, f32 acc)."""
    x = x_nchw.astype(compute_dtype)
    w = w_oihw.astype(compute_dtype)
    conv = lax.conv_general_dilated(
        x, w, window_strides=(1, 1), padding="SAME",
        dimension_numbers=("NCHW", "OIHW", "NCHW"),
        preferred_element_type=jnp.float32)
    conv = conv + bias.astype(jnp.float32)[None, :, None, None]
    mean = jnp.mean(conv, axis=(2, 3), keepdims=True)
    var = jnp.mean((conv - mean) ** 2, axis=(2, 3), keepdims=True)
    normed = (conv - mean) * lax.rsqrt(var + eps)
    return jnp.maximum(normed, 0.0)


if __name__ == "__main__":
    # Small shapes consistent with the module: N=2, C_in=4, H=W=16, filters=8.
    N, C_in, H, W = 2, 4, 16, 16
    C_out, KH, KW = 8, 3, 3

    key = jax.random.PRNGKey(0)
    kx, kw_, kb = jax.random.split(key, 3)

    x = jax.random.normal(kx, (N, C_in, H, W), dtype=jnp.float32)
    # PyTorch Conv2d weight layout: (C_out, C_in, KH, KW).
    w = jax.random.normal(kw_, (C_out, C_in, KH, KW), dtype=jnp.float32) * 0.1
    b = jax.random.normal(kb, (C_out,), dtype=jnp.float32) * 0.1

    out = jax.block_until_ready(conv_block_forward(x, w, b))
    ref = jax.block_until_ready(_reference(x, w, b))

    assert out.shape == (N, C_out, H, W), out.shape
    err = float(jnp.max(jnp.abs(out - ref)))
    assert err < 2e-3, err

    print("KERNEL_OK")
</pallas_src>

<mosaic_0001>
module attributes {stable_mosaic.version = 11 : i64} {
  func.func @_conv_block_kernel(%arg0: i32, %arg1: memref<1x36x256xbf16, #tpu.memory_space<vmem>>, %arg2: memref<8x36xbf16, #tpu.memory_space<vmem>>, %arg3: memref<8x1xf32, #tpu.memory_space<vmem>>, %arg4: memref<1x8x256xf32, #tpu.memory_space<vmem>>) attributes {dimension_semantics = [#tpu.dimension_semantics<parallel>], iteration_bounds = array<i64: 2>, scalar_prefetch = 0 : i64, scratch_operands = 0 : i64, tpu.core_type = #tpu.core_type<tc>, window_params = [{transform_indices = @transform_0, window_bounds = array<i64: 1, 36, 256>}, {pipeline_mode = #tpu.pipeline_mode<synchronous>, transform_indices = @transform_1, window_bounds = array<i64: 8, 36>}, {pipeline_mode = #tpu.pipeline_mode<synchronous>, transform_indices = @transform_2, window_bounds = array<i64: 8, 1>}, {transform_indices = @transform_3, window_bounds = array<i64: 1, 8, 256>}]} {
    %c0 = arith.constant 0 : index
    %c0_0 = arith.constant 0 : index
    %c0_1 = arith.constant 0 : index
    %0 = vector.load %arg1[%c0, %c0_0, %c0_1] : memref<1x36x256xbf16, #tpu.memory_space<vmem>>, vector<1x36x256xbf16>
    %1 = vector.shape_cast %0 : vector<1x36x256xbf16> to vector<36x256xbf16>
    %c0_2 = arith.constant 0 : index
    %c0_3 = arith.constant 0 : index
    %2 = vector.load %arg2[%c0_2, %c0_3] : memref<8x36xbf16, #tpu.memory_space<vmem>>, vector<8x36xbf16>
    %cst = arith.constant dense<0.000000e+00> : vector<8x256xf32>
    %3 = tpu.matmul %2, %1, %cst {dimension_numbers = #tpu.dot_dimension_numbers<[1], [0], [0], [1], [0, 0, 1, 1], [], []>} : vector<8x36xbf16>, vector<36x256xbf16>, vector<8x256xf32> -> vector<8x256xf32>
    %c0_4 = arith.constant 0 : index
    %c0_5 = arith.constant 0 : index
    %4 = vector.load %arg3[%c0_4, %c0_5] : memref<8x1xf32, #tpu.memory_space<vmem>>, vector<8x1xf32>
    %5 = vector.broadcast %4 : vector<8x1xf32> to vector<8x256xf32>
    %6 = arith.addf %3, %5 : vector<8x256xf32>
    %cst_6 = arith.constant dense<0.000000e+00> : vector<8xf32>
    %7 = vector.multi_reduction <add>, %6, %cst_6 [1] : vector<8x256xf32> to vector<8xf32>
    %8 = vector.shape_cast %7 : vector<8xf32> to vector<8x1xf32>
    %cst_7 = arith.constant 2.560000e+02 : f32
    %9 = vector.broadcast %cst_7 : f32 to vector<8x1xf32>
    %10 = arith.divf %8, %9 : vector<8x1xf32>
    %11 = vector.broadcast %10 : vector<8x1xf32> to vector<8x256xf32>
    %12 = arith.subf %6, %11 : vector<8x256xf32>
    %13 = arith.mulf %12, %12 : vector<8x256xf32>
    %cst_8 = arith.constant dense<0.000000e+00> : vector<8xf32>
    %14 = vector.multi_reduction <add>, %13, %cst_8 [1] : vector<8x256xf32> to vector<8xf32>
    %15 = vector.shape_cast %14 : vector<8xf32> to vector<8x1xf32>
    %cst_9 = arith.constant 2.560000e+02 : f32
    %16 = vector.broadcast %cst_9 : f32 to vector<8x1xf32>
    %17 = arith.divf %15, %16 : vector<8x1xf32>
    %cst_10 = arith.constant 9.99999974E-6 : f32
    %18 = vector.broadcast %cst_10 : f32 to vector<8x1xf32>
    %19 = arith.addf %17, %18 : vector<8x1xf32>
    %20 = math.rsqrt %19 : vector<8x1xf32>
    %21 = vector.broadcast %20 : vector<8x1xf32> to vector<8x256xf32>
    %22 = arith.mulf %12, %21 : vector<8x256xf32>
    %cst_11 = arith.constant 0.000000e+00 : f32
    %23 = vector.broadcast %cst_11 : f32 to vector<8x256xf32>
    %24 = arith.maximumf %22, %23 : vector<8x256xf32>
    %c0_12 = arith.constant 0 : index
    %c0_13 = arith.constant 0 : index
    %c0_14 = arith.constant 0 : index
    %25 = vector.load %arg4[%c0_12, %c0_13, %c0_14] : memref<1x8x256xf32, #tpu.memory_space<vmem>>, vector<1x8x256xf32>
    %26 = vector.shape_cast %25 : vector<1x8x256xf32> to vector<8x256xf32>
    %27 = vector.shape_cast %24 : vector<8x256xf32> to vector<1x8x256xf32>
    tpu.vector_store %arg4[%c0_12, %c0_13, %c0_14], %27 {strides = array<i32>} : memref<1x8x256xf32, #tpu.memory_space<vmem>>, vector<1x8x256xf32>,
    return
  }
  func.func @transform_0(%arg0: i32) -> (i32, i32, i32) {
    %c0_i32 = arith.constant 0 : i32
    %c0_i32_0 = arith.constant 0 : i32
    %c0_i32_1 = arith.constant 0 : i32
    return %arg0, %c0_i32, %c0_i32_0 : i32, i32, i32
  }
  func.func @transform_1(%arg0: i32) -> (i32, i32) {
    %c0_i32 = arith.constant 0 : i32
    %c0_i32_0 = arith.constant 0 : i32
    %c0_i32_1 = arith.constant 0 : i32
    return %c0_i32, %c0_i32_0 : i32, i32
  }
  func.func @transform_2(%arg0: i32) -> (i32, i32) {
    %c0_i32 = arith.constant 0 : i32
    %c0_i32_0 = arith.constant 0 : i32
    %c0_i32_1 = arith.constant 0 : i32
    return %c0_i32, %c0_i32_0 : i32, i32
  }
  func.func @transform_3(%arg0: i32) -> (i32, i32, i32) {
    %c0_i32 = arith.constant 0 : i32
    %c0_i32_0 = arith.constant 0 : i32
    %c0_i32_1 = arith.constant 0 : i32
    return %arg0, %c0_i32, %c0_i32_0 : i32, i32, i32
  }
}

</mosaic_0001>

<bundles_post_ra>
// kernel: tpu_custom_call.1
= control target key start
LH: loop header
LB: loop body
LE: loop exit
PB: predicated region body
PF: predicated region fallthrough
CT: control target
= control target key end

     0   :  { %8 = vsyncpa [#allocation3], 0  ;;  %s618_s0 = inlined_call_operand.vmem [shape: bf16[2,36,256], index: 0, kind: input, shape index: {}]   ;;  %s619_s1 = inlined_call_operand.vmem [shape: bf16[8,36], index: 1, kind: input, shape index: {}]   ;;  %s620_s2 = inlined_call_operand.vmem [shape: f32[8,1], index: 2, kind: input, shape index: {}]   ;;  %s621_s3 = inlined_call_operand.hbm [shape: f32[2,8,256], index: 3, kind: output, shape index: {}]  }
   0x1   :  { %10 = vsyncpa [#allocation3 + $0x1], 0  ;;  %s512_s12 = smov 0   ;;  %s514_s13 = smov 0  }
   0x2   :  { %s516_s14 = smov 0   ;;  %s518_s15 = smov 0  }
   0x3 LB: > { %s533_s16 = sadd.s32 4294967295, %s488_s15   ;;  %s354_s17 = sadd.s32 4294967294, %s488_s15   ;;  %s488_s15 = sphi %s518_s15, %s627_s15   ;;  %s484_s14 = sphi %s516_s14, %s626_s14   ;;  %s480_s13 = sphi %s514_s13, %s625_s13   ;;  %s476_s12 = sphi %s512_s12, %s624_s12  }
   0x4   : > { %s537_s18 = sadd.s32 1, %s488_s15   ;;  %s91_s19 = sadd.s32 1, %s484_s14 }
   0x5   : > { %s88_s20 = ssub.s32 %s488_s15, %s537_s18  ;;  %p101_p0 = scmp.ne.s32.totalorder %s484_s14, %s480_s13 }
   0x6   : > { %p89_p1 = scmp.eq.s32.totalorder %s88_s20, 0  ;;  %p102_p2 = scmp.eq.s32.totalorder %s533_s16, 1 }
   0x7   : > { %p107_p3 = scmp.ne.s32.totalorder %s480_s13, %s476_s12  ;;  %p108_p4 = scmp.eq.s32.totalorder %s354_s17, 1 }
   0x8   : > { %s548_s21 = scalar_select %p89_p1, %s484_s14, %s91_s19  }
   0x9   : > { %p550_p5 = por %p102_p2, %p101_p0  ;;  %p554_p6 = por %p108_p4, %p107_p3 }
   0xa   : > { %p357_p7 = scmp.ge.s32.totalorder %s488_s15, 1  ;;  %p140_p8 = scmp.lt.s32.totalorder %s488_s15, 3 }
   0xc   : > { %p141_p9 = pnand %p357_p7, %p140_p8 }
   0xd   : > { %p164_p10 = scmp.lt.s32.totalorder (!%p141_p9), %s533_s16, 1  ;;  %v490_v0 = vmov (!%p141_p9), 0   ;;  %v176_v1 = vld [vmem:[%s620_s2] sm:$0xff] (!%p141_p9)  ;;  %vm211_vm0 = vcmask (!%p141_p9), 1041408   ;;  %vm207_vm1 = vcmask (!%p141_p9), 293888   ;;  %s161_s6 = sand.u32 (!%p141_p9), 1, %s480_s13  }
   0xe   : > { %144 = sbr.rel (%p141_p9) target bundleno = 581 (0x245), region = 32  ;;  %250 = vmatprep.mubr.bf16.mxu0 (!%p141_p9), %v490_v0  ;;  %415 = vset.pattern.permute.xlu0 (!%p141_p9), %v490_v0  ;;  %v175_v10 = vld [vmem:[%s619_s1] sm:$0xf] (!%p141_p9)  ;;  %s358_s7 = sshll.u32 (!%p141_p9), %s161_s6, 4 }
   0xf   : > { %179 = vperm.xlu0 (!%p141_p9), %415, %v176_v1   ;;  %s373_s8 = sshll.u32 (!%p141_p9), %s533_s16, 8  ;;  %s163_s9 = scalar_lea.vmem (!%p141_p9), [#allocation2], %s358_s7 }
  0x10   : > { %s295_s10 = sshll.u32 (!%p141_p9), %s163_s9, 4  ;;  %s576_s19 = scalar_lea.hbm (!%p141_p9), %s621_s3, %s373_s8  ;;  %s578_s10 = int_to_ptr.vmem [resolvable:$true] %s295_s10 }
  0x11   : > { %s281_s20 = scalar_lea.sflag (!%p141_p9), [#allocation3], %s161_s6  ;;  %s491_s24 = smov (!%p141_p9), [#allocation2]  }
  0x12   : > { %s430_s25 = sshll.u32 (!%p141_p9), %s491_s24, 4  ;;  %s431_s25 = int_to_ptr.vmem [resolvable:$false] %s430_s25 }
  0x13   : > { %p433_p0 = scmp.lt.s32.totalorder (!%p141_p9), %s578_s10, %s431_s25 }
  0x15   : > { %s165_s26 = scalar_select %p164_p10, %s533_s16, 1 }
  0x16   : > { %s426_s16 = scalar_lea.vmem %s578_s10, 256 }
  0x17   : > { %s374_s27 = smul.u32 40, %s165_s26  ;;  %p427_p11 = scmp.ne.s32.totalorder %s578_s10, %s426_s16 }
  0x18   : > { %s432_s26 = scalar_lea.vmem %s431_s25, 512 }
  0x19   : > { %s168_s30 = scalar_lea.vmem %s618_s0, %s374_s27  ;;  %p428_p12 = pnand %p427_p11, %p550_p5 }
  0x1a   : > { %v416_v2 = vld [vmem:[%s168_s30 + $0x4] ss:$8 sps:$4 sm:$0xff]   ;;  %v418_v3 = vld [vmem:[%s168_s30] ss:$8 sps:$4 sm:$0xff]   ;;  %v419_v4 = vld [vmem:[%s168_s30 + $0x14] ss:$8 sps:$4 sm:$0xff]   ;;  %p434_p1 = scmp.lt.s32.totalorder %s432_s26, %s426_s16 }
  0x1b   : > { %218 = vmatprep.subr.bf16.mxu0 %v416_v2  ;;  %v174_v5 = vld [vmem:[%s168_s30 + $0x20] sm:$0x33]  ;;  %v421_v6 = vld [vmem:[%s168_s30 + $0x10] ss:$8 sps:$4 sm:$0xff]   ;;  %p429_p13 = pneg %p428_p12 }
  0x1c   : > { %219 = vmatpush1.bf16.msra.mxu0 %v418_v3  ;;  %v365_v7 = vcombine.high %v174_v5, %v174_v5  ;;  %v364_v8 = vcombine.low %v174_v5, %v174_v5  ;;  %p435_p2 = por %p434_p1, %p433_p0 }
  0x1d   : > { %220 = vmatprep.subr.bf16.mxu0 %v419_v4 }
  0x1e   : > { %v213_v9 = vsel %vm211_vm0, %v364_v8, 0  ;;  %p436_p3 = pnand %p435_p2, %p429_p13 }
  0x20   : > { %221 = vmatpush1.bf16.msra.mxu0 %v421_v6 }
  0x21   : > { %366 = vmatprep.subr.msk.bf16.mxu0 %vm211_vm0, %v365_v7 }
  0x24   : > { %223 = vmatpush1.bf16.msra.mxu0 %v213_v9 }
  0x27   : > { %367 = vmatmul.mubr.msk.bf16.vlgmr.msra.gmra.mrb[0].mxu0 %vm207_vm1, %v175_v10 }
  0x8e   : > { %v180_v11 = vpop.permute.xlu0 %179 }
  0xfa   : > { %v252_v12 = vpop.f32.mrb[0].mxu0 }
  0xfb   : > { %v253_v13 = vadd.f32 %v252_v12, %v180_v11  ;;  %v254_v14 = vpop.f32.mrb[1].mxu0 }
  0xfc   : > { %v255_v15 = vadd.f32 %v254_v14, %v180_v11  ;;  %v256_v16 = vpop.f32.mrb[2].mxu0 }
  0xfd   : > { %v257_v17 = vpop.f32.mrb[3].mxu0 }
  0xfe   : > { %v259_v18 = vadd.f32 %v255_v15, %v253_v13 }
 0x100   : > { %260 = vadd.xlane.f32.xlu0 %v259_v18 }
 0x18d   : > { %v261_v19 = vpop.xlane.xlu0 %260 }
 0x18e   : > { %v263_v20 = vmul.f32 0.00390625, %v261_v19 }
 0x190   : > { %v264_v21 = vsub.f32 %v253_v13, %v263_v20  ;;  %v265_v22 = vsub.f32 %v255_v15, %v263_v20 }
 0x192   : > { %v266_v23 = vmul.f32 %v264_v21, %v264_v21  ;;  %v267_v24 = vmul.f32 %v265_v22, %v265_v22 }
 0x194   : > { %v268_v25 = vadd.f32 %v267_v24, %v266_v23 }
 0x196   : > { %269 = vadd.xlane.f32.xlu1 %v268_v25 }
 0x223   : > { %v270_v26 = vpop.xlane.xlu1 %269 }
 0x224   : > { %v271_v27 = vmul.f32 0.00390625, %v270_v26 }
 0x226   : > { %v272_v28 = vadd.f32 1e-05, %v271_v27 }
 0x228   : > { %424 = vrsqrt.f32 %v272_v28 }
 0x232   : > { %v425_v29 = vpop.eup %424 }
 0x233   : > { %v274_v30 = vmul.f32 %v425_v29, %v264_v21  ;;  %v275_v31 = vmul.f32 %v425_v29, %v265_v22 }
 0x235   : > { %v276_v32 = vmax.f32 %v274_v30, 0.0  ;;  %v277_v33 = vmax.f32 %v275_v31, 0.0 }
 0x237   : > { %278 = vst [vmem:[%s163_s9] sm:$0xff] %v276_v32  ;;  %279 = vst [vmem:[%s163_s9 + $0x8] sm:$0xff] %v277_v33 }
 0x238   : > { %439 = shalt.err (!%p436_p3)
}
 0x239   : > { %s440_s27 = scalar_lea.hbm %s576_s19, 256  ;;  %s444_s30 = scalar_lea.hbm %s621_s3, 512 }
 0x23a   : > { %p441_p4 = scmp.ne.s32.totalorder %s576_s19, %s440_s27  ;;  %p445_p9 = scmp.lt.u32.totalorder %s576_s19, %s621_s3 }
 0x23b   : > { %p446_p10 = scmp.lt.u32.totalorder %s444_s30, %s440_s27  ;;  %p448_p12 = scmp.lt.u32.totalorder %s440_s27, %s576_s19 }
 0x23c   : > { %p442_p7 = pnand %p441_p4, %p550_p5 }
 0x23d   : > { %p447_p11 = por %p446_p10, %p445_p9 }
 0x23e   : > { %p443_p8 = pneg %p442_p7 }
 0x23f   : > { %p449_p13 = por %p448_p12, %p447_p11 }
 0x241   : > { %p450_p0 = pnand %p449_p13, %p443_p8 }
 0x243   : > { %453 = shalt.err (!%p450_p0)
}
 0x244   : > { %375 = dma.vmem_to_hbm [thread:$0]  (%p550_p5), %s578_s10, 256, %s576_s19, %s281_s20  }
 0x245 PF: > { %p381_p1 = scmp.ge.s32.totalorder %s488_s15, 2  ;;  %s307_s6 = sand.u32 1, %s476_s12  }
 0x246   : > { %s308_s7 = scalar_lea.sflag [#allocation3], %s307_s6 }
 0x247   : > { %p378_p2 = pnand %p381_p1, %p554_p6 }
 0x249   : > { %471 = dma.done.wait (!%p378_p2), %s308_s7, 256  }
 0x24a   : > { %473 = vsyncadd (!%p378_p2), %s308_s7, 4294967040  ;;  %p13_p3 = scmp.ge.s32.totalorder %s537_s18, 4   ;;  %s624_s12 = smov %s480_s13 }
 0x24b   : > { %s625_s13 = smov %s484_s14  ;;  %s626_s14 = smov %s548_s21 }
 0x24c   : > { %s627_s15 = smov %s537_s18  ;;  %15 = sbr.rel (!%p13_p3) target bundleno = 3 (0x3), region = 67 }
 0x253   :  { %313 = vsyncpa [#allocation3], 1 }
 0x254   :  { %315 = vsyncpa [#allocation3 + $0x1], 1 }

</bundles_post_ra>
